<compile_context>
chip_gen: v5e
topology: v5e:2x2
jax: 0.10.0
libtpu: 0.0.40
codegen_flags: <defaults>
</compile_context>

<pallas_src>
import jax
import jax.numpy as jnp
from jax.experimental import pallas as pl
from jax.experimental.pallas import tpu as pltpu


def _copy_kernel(x_ref, o_ref):
    # The chomp is realized entirely by the output shape / BlockSpecs; edge
    # blocks are padded on load and clipped on store by the Pallas pipeline.
    o_ref[...] = x_ref[...]


def _round_up(x: int, m: int) -> int:
    return ((x + m - 1) // m) * m


def _cdiv(a: int, b: int) -> int:
    return (a + b - 1) // b


_LANE = 128                      # lane width of a vreg / min lane-dense tile
_MAX_TL = 2048                   # lane-tile cap (raised from 1024 per review)
_TARGET_BLOCK_BYTES = 4 << 20    # ~4 MiB per block (in+out double-buffered ~16 MiB)
_VMEM_LIMIT_BYTES = 48 << 20     # explicit scoped-VMEM limit, safe on v5e/v6e/v7x


def _pick_tl(l_out: int) -> int:
    """Lane tile: multiple of 128, <= _MAX_TL, minimizing the ragged tail."""
    padded = _round_up(l_out, _LANE)
    if padded <= _MAX_TL:
        return padded  # single column block, minimal padded tail
    best_tl = _MAX_TL
    best_waste = None
    for tl in range(_MAX_TL, _LANE - 1, -_LANE):  # prefer larger tl on ties
        waste = _cdiv(l_out, tl) * tl - l_out
        if best_waste is None or waste < best_waste:
            best_tl, best_waste = tl, waste
    return best_tl


def chomp1d(x: jax.Array, chomp_size: int) -> jax.Array:
    """Equivalent of Chomp1d(chomp_size)(x) for x of shape (N, C, L)."""
    n, c, l = x.shape
    assert 1 <= chomp_size < l, "chomp_size must be in [1, L) (PyTorch x[:,:,:-k])"
    l_out = l - chomp_size

    # Small-L_out fast path: masked stores / tiny DMA bursts crater bandwidth
    # in Pallas here; a plain XLA slice is strictly better.
    if l_out < _LANE:
        return x[:, :, :l_out]

    rows = n * c
    x2d = x.reshape(rows, l)  # contiguous (N, C, L) -> (N*C, L), free reshape

    itemsize = jnp.dtype(x.dtype).itemsize
    # Sublane packing: f32 -> 8, bf16 -> 16, int8/fp8 -> 32.
    sublane = max(8, 32 // itemsize)

    tl = _pick_tl(l_out)
    # Row tile: keep one (tr, tl) block near the target byte budget.
    max_tr = max(sublane,
                 (_TARGET_BLOCK_BYTES // (tl * itemsize)) // sublane * sublane)
    tr = min(_round_up(rows, sublane), max_tr)

    grid_r = _cdiv(rows, tr)
    grid_c = _cdiv(l_out, tl)
    # v7x has 2 TensorCores: make sure the parallel grid has >= 2 steps when
    # the problem is splittable, so both cores get DMA work.
    if grid_r * grid_c < 2 and rows > sublane:
        tr = _round_up(_cdiv(rows, 2), sublane)
        grid_r = _cdiv(rows, tr)

    bytes_accessed = 2 * rows * l_out * itemsize  # read + write of the kept data

    out2d = pl.pallas_call(
        _copy_kernel,
        out_shape=jax.ShapeDtypeStruct((rows, l_out), x.dtype),
        grid=(grid_r, grid_c),
        in_specs=[pl.BlockSpec((tr, tl), lambda i, j: (i, j))],
        out_specs=pl.BlockSpec((tr, tl), lambda i, j: (i, j)),
        compiler_params=pltpu.CompilerParams(
            dimension_semantics=("parallel", "parallel"),
            vmem_limit_bytes=_VMEM_LIMIT_BYTES,
        ),
        cost_estimate=pl.CostEstimate(
            flops=0, transcendentals=0, bytes_accessed=bytes_accessed),
    )(x2d)

    return out2d.reshape(n, c, l_out)


if __name__ == "__main__":
    key = jax.random.PRNGKey(0)

    # Case 1: the module's nominal small shape (l_out < 128 -> XLA fast path).
    N, C, L, chomp = 2, 4, 16, 3
    x = jax.random.normal(key, (N, C, L), dtype=jnp.float32)
    out = jax.block_until_ready(chomp1d(x, chomp))
    ref = x[:, :, :-chomp]
    assert out.shape == (N, C, L - chomp), out.shape
    assert out.dtype == x.dtype
    assert jnp.array_equal(out, ref), "mismatch vs reference slice (case 1)"

    # Case 2: ragged tiles through the Pallas path (rows % 8 != 0,
    # l_out % 128 != 0) and a >=2-step grid for v7x.
    N2, C2, L2, chomp2 = 3, 5, 300, 7
    x2 = jax.random.normal(jax.random.PRNGKey(0), (N2, C2, L2), dtype=jnp.float32)
    out2 = jax.block_until_ready(chomp1d(x2, chomp2))
    ref2 = x2[:, :, :-chomp2]
    assert out2.shape == (N2, C2, L2 - chomp2), out2.shape
    assert jnp.array_equal(out2, ref2), "mismatch vs reference slice (case 2)"

    # Case 3: longer sequence exercising the multi-column-block / tl-cap path.
    N3, C3, L3, chomp3 = 2, 4, 4096, 5
    x3 = jax.random.normal(jax.random.PRNGKey(0), (N3, C3, L3), dtype=jnp.float32)
    out3 = jax.block_until_ready(chomp1d(x3, chomp3))
    ref3 = x3[:, :, :-chomp3]
    assert out3.shape == (N3, C3, L3 - chomp3), out3.shape
    assert jnp.array_equal(out3, ref3), "mismatch vs reference slice (case 3)"

    print("KERNEL_OK")
</pallas_src>

<mosaic_0001>
module attributes {stable_mosaic.version = 11 : i64} {
  func.func @_copy_kernel(%arg0: i32, %arg1: i32, %arg2: memref<8x384xf32, #tpu.memory_space<vmem>>, %arg3: memref<8x384xf32, #tpu.memory_space<vmem>>) attributes {dimension_semantics = [#tpu.dimension_semantics<parallel>, #tpu.dimension_semantics<parallel>], iteration_bounds = array<i64: 2, 1>, scalar_prefetch = 0 : i64, scratch_operands = 0 : i64, tpu.core_type = #tpu.core_type<tc>, window_params = [{transform_indices = @transform_0, window_bounds = array<i64: 8, 384>}, {transform_indices = @transform_1, window_bounds = array<i64: 8, 384>}]} {
    %c0 = arith.constant 0 : index
    %c0_0 = arith.constant 0 : index
    %0 = vector.load %arg2[%c0, %c0_0] : memref<8x384xf32, #tpu.memory_space<vmem>>, vector<8x384xf32>
    %c0_1 = arith.constant 0 : index
    %c0_2 = arith.constant 0 : index
    %1 = vector.load %arg3[%c0_1, %c0_2] : memref<8x384xf32, #tpu.memory_space<vmem>>, vector<8x384xf32>
    tpu.vector_store %arg3[%c0_1, %c0_2], %0 {strides = array<i32>} : memref<8x384xf32, #tpu.memory_space<vmem>>, vector<8x384xf32>,
    return
  }
  func.func @transform_0(%arg0: i32, %arg1: i32) -> (i32, i32) {
    %c0_i32 = arith.constant 0 : i32
    return %arg0, %arg1 : i32, i32
  }
  func.func @transform_1(%arg0: i32, %arg1: i32) -> (i32, i32) {
    %c0_i32 = arith.constant 0 : i32
    return %arg0, %arg1 : i32, i32
  }
}

</mosaic_0001>

<bundles_post_ra>
// kernel: tpu_custom_call.1
= control target key start
LH: loop header
LB: loop body
LE: loop exit
PB: predicated region body
PF: predicated region fallthrough
CT: control target
= control target key end

     0   :  { %6 = vsyncpa [#allocation3], 0  ;;  %s583_s0 = inlined_call_operand.hbm [shape: f32[15,300], index: 0, kind: input, shape index: {}]   ;;  %s584_s1 = inlined_call_operand.hbm [shape: f32[15,293], index: 1, kind: output, shape index: {}]  }
   0x1   :  { %8 = vsyncpa [#allocation3 + $0x1], 0 }
   0x2   :  { %9 = vsyncpa [#allocation4], 0 }
   0x3   :  { %11 = vsyncpa [#allocation4 + $0x1], 0  ;;  %s463_s6 = smov 0   ;;  %s465_s7 = smov 0  }
   0x4   :  { %s467_s8 = smov 0   ;;  %s469_s9 = smov 0  }
   0x5   :  { %s471_s10 = smov 0   ;;  %s473_s11 = smov 0  }
   0x6 LB: > { %s264_s12 = sadd.s32 4294967295, %s451_s11   ;;  %s265_s13 = sadd.s32 4294967294, %s451_s11   ;;  %s451_s11 = sphi %s473_s11, %s17_s11   ;;  %s447_s10 = sphi %s471_s10, %s593_s10   ;;  %s443_s9 = sphi %s469_s9, %s592_s9   ;;  %s439_s8 = sphi %s467_s8, %s591_s8   ;;  %s435_s7 = sphi %s465_s7, %s590_s7   ;;  %s431_s6 = sphi %s463_s6, %s589_s6  }
   0x7   : > { %s29_s14 = sadd.s32 1, %s447_s10  ;;  %s38_s15 = sadd.s32 1, %s439_s8 }
   0x8   : > { %p31_p0 = scmp.ge.s32.totalorder %s29_s14, 2  ;;  %p45_p1 = scmp.ne.s32.totalorder %s439_s8, %s435_s7 }
   0x9   : > { %p46_p2 = scmp.eq.s32.totalorder %s451_s11, 0  ;;  %p51_p3 = scmp.ne.s32.totalorder %s435_s7, %s431_s6 }
   0xa   : > { %s595_s14 = smov (%p31_p0, %s29_s14), 0  ;;  %p52_p5 = scmp.eq.s32.totalorder %s264_s12, 0 }
   0xb   : > { %p504_p4 = por %p46_p2, %p45_p1  ;;  %s33_s17 = ssub.s32 %s447_s10, %s595_s14 }
   0xc   : > { %p77_p6 = scmp.eq.s32.totalorder %s264_s12, 1  ;;  %p36_p7 = scmp.eq.s32.totalorder %s33_s17, 0 }
   0xd   : > { %p510_p8 = por %p52_p5, %p51_p3  ;;  %p83_p10 = scmp.eq.s32.totalorder %s265_s13, 1 }
   0xe   : > { %p514_p9 = por %p77_p6, %p45_p1  ;;  %p267_p12 = scmp.ge.s32.totalorder %s451_s11, 2 }
   0xf   : > { %s519_s20 = scalar_select %p36_p7, %s439_s8, %s38_s15  }
  0x10   : > { %p521_p11 = por %p83_p10, %p51_p3  ;;  %p289_p13 = scmp.lt.s32.totalorder %s451_s11, 2 }
  0x11   : > { %s103_s22 = sand.u32 1, %s439_s8   ;;  %s274_s24 = smul.u32 24, %s447_s10 }
  0x12   : > { %s273_s23 = smul.u32 24, %s103_s22  ;;  %p282_p0 = pnand %p289_p13, %p504_p4 }
  0x13   : > { %p269_p2 = scmp.ge.s32.totalorder %s451_s11, 1  ;;  %s114_s27 = scalar_lea.hbm %s583_s0, %s274_s24 }
  0x14   : > { %s107_s28 = scalar_lea.vmem [#allocation2], %s273_s23  ;;  %s116_s30 = sshll.u32 %s114_s27, 4  ;;  %s117_s30 = int_to_ptr.hbm [resolvable:$true] %s116_s30 }
  0x15   : > { %s118_s29 = sshll.u32 %s107_s28, 4  ;;  %s104_s2 = scalar_lea.sflag [#allocation3], %s103_s22  ;;  %s119_s29 = int_to_ptr.vmem [resolvable:$true] %s118_s29 }
  0x16   : > { %284 = dma.hbm_to_vmem [thread:$0]  (!%p282_p0), %s117_s30, 384, %s119_s29, %s104_s2  }
  0x17   : > { %p123_p1 = scmp.lt.s32.totalorder %s451_s11, 3 }
  0x19   : > { %p124_p3 = pnand %p269_p2, %p123_p1 }
  0x1a   : > { %s537_s3 = sand.u32 (!%p124_p3), 1, %s435_s7  }
  0x1b   : > { %127 = sbr.rel (%p124_p3) target bundleno = 49 (0x31), region = 24  ;;  %s130_s5 = scalar_lea.sflag (!%p124_p3), [#allocation3], %s537_s3 }
  0x1c   : > { %s275_s4 = smul.u32 (!%p124_p3), 24, %s537_s3 }
  0x1e   : > { %s133_s12 = scalar_lea.vmem (!%p124_p3), [#allocation2], %s275_s4 }
  0x20   : > { %422 = dma.done.wait (%p510_p8), %s130_s5, 384  }
  0x21   : > { %424 = vsyncadd (%p510_p8), %s130_s5, 4294966912  ;;  %s276_s13 = smul.u32 24, %s443_s9  ;;  %s152_s22 = scalar_lea.vmem [#allocation5], %s275_s4  ;;  %v155_v0 = vld [vmem:[%s133_s12] sm:$0xff]  ;;  %v156_v1 = vld [vmem:[%s133_s12 + $0x8] sm:$0xff] }
  0x22   : > { %s177_s23 = sshll.u32 %s152_s22, 4  ;;  %v157_v2 = vld [vmem:[%s133_s12 + $0x10] sm:$0xff]  ;;  %158 = vst [vmem:[%s152_s22] sm:$0xff] %v155_v0  ;;  %s162_s18 = scalar_lea.sflag [#allocation4], %s537_s3  ;;  %s178_s23 = int_to_ptr.vmem [resolvable:$true] %s177_s23 }
  0x23   : > { %s175_s17 = scalar_lea.hbm %s584_s1, %s276_s13  ;;  %159 = vst [vmem:[%s152_s22 + $0x8] sm:$0xff] %v156_v1  ;;  %s389_s28 = scalar_lea.hbm %s584_s1, 48 }
  0x24   : > { %s179_s24 = sshll.u32 %s175_s17, 4  ;;  %160 = vst [vmem:[%s152_s22 + $0x10] sm:$0xff] %v157_v2  ;;  %s180_s24 = int_to_ptr.hbm [resolvable:$true] %s179_s24 }
  0x25   : > { %s383_s25 = sshra.s32 %s180_s24, 4  ;;  %s384_s25 = int_to_ptr.hbm [resolvable:$true] %s383_s25 }
  0x26   : > { %s385_s9 = scalar_lea.hbm %s384_s25, 24  ;;  %p390_p7 = scmp.lt.s32.totalorder %s384_s25, %s584_s1 }
  0x27   : > { %p386_p4 = scmp.ne.s32.totalorder %s384_s25, %s385_s9  ;;  %p391_p8 = scmp.lt.s32.totalorder %s389_s28, %s385_s9 }
  0x29   : > { %p387_p5 = pnand %p386_p4, %p514_p9  ;;  %p392_p10 = por %p391_p8, %p390_p7 }
  0x2b   : > { %p388_p6 = pneg %p387_p5 }
  0x2d   : > { %p393_p13 = pnand %p392_p10, %p388_p6 }
  0x2f   : > { %396 = shalt.err (!%p393_p13)
}
  0x30   : > { %279 = dma.vmem_to_hbm [thread:$0]  (%p514_p9), %s178_s23, 384, %s180_s24, %s162_s18  }
  0x31 PF: > { %s191_s2 = sand.u32 1, %s431_s6   ;;  %p286_p0 = pnand %p267_p12, %p521_p11 }
  0x32   : > { %s192_s3 = scalar_lea.sflag [#allocation4], %s191_s2 }
  0x33   : > { %p287_p2 = pneg %p286_p0 }
  0x35   : > { %426 = dma.done.wait (%p287_p2), %s192_s3, 384  }
  0x36   : > { %428 = vsyncadd (%p287_p2), %s192_s3, 4294966912  ;;  %s17_s11 = sadd.s32 1, %s451_s11   ;;  %s589_s6 = smov %s435_s7 }
  0x37   : > { %p14_p1 = scmp.ge.s32.totalorder %s17_s11, 4   ;;  %s590_s7 = smov %s439_s8 }
  0x38   : > { %s591_s8 = smov %s519_s20  ;;  %s592_s9 = smov %s447_s10 }
  0x39   : > { %s593_s10 = smov %s595_s14  ;;  %16 = sbr.rel (!%p14_p1) target bundleno = 6 (0x6), region = 69 }
  0x3e   :  { %198 = vsyncpa [#allocation3], 1 }
  0x3f   :  { %200 = vsyncpa [#allocation3 + $0x1], 1 }
  0x40   :  { %201 = vsyncpa [#allocation4], 1 }
  0x41   :  { %203 = vsyncpa [#allocation4 + $0x1], 1 }

</bundles_post_ra>
